<compile_context>
chip_gen: v7x
topology: tpu7x:2x2x1
jax: 0.10.0
libtpu: 0.0.40
codegen_flags: <defaults>
</compile_context>

<pallas_src>
import functools

import jax
import jax.numpy as jnp
from jax.experimental import pallas as pl
from jax.experimental.pallas import tpu as pltpu

EPS = 1e-5


def net_kernel(x_ref, p_ref, out_ref, *, D, LP):
    # x_ref : (G_blk, N, L) lane-packed activations; L = LP*D (128 when D=32),
    #         each instance owns its own LP-th of the lanes.
    # p_ref : single parameter slab, width L2 = 2*L:
    #         rows [0,L)        : block-diag w1   (L,  L2)
    #         rows [L,L+L2)     : block-diag w2   (L2, L2)
    #         rows [L+L2,L+2L2) : lanes[0:L]  block-diag w3 (L2, L)
    #         rows [L+L2,L+L2+L): lanes[L:L2] block-diag wl (L,  L)
    #         row  r+0          : [gamma | beta]
    #         row  r+1          : [b3    | 0   ]
    #         row  r+2          : b1
    #         row  r+3          : b2
    L = LP * D
    L2 = 2 * L

    x = x_ref[...].astype(jnp.float32)                    # (G, N, L)
    G, N, _ = x.shape

    # ---- carve parameter slab (static, lane-tile-aligned slices) -------------
    w1 = p_ref[0:L, :]
    w2 = p_ref[L:L + L2, :]
    w3 = p_ref[L + L2:L + 2 * L2, 0:L]
    wl = p_ref[L + L2:L + L2 + L, L:L2]
    r = L + 2 * L2
    gamma = p_ref[r + 0:r + 1, 0:L].astype(jnp.float32)   # (1, L)
    beta = p_ref[r + 0:r + 1, L:L2].astype(jnp.float32)   # (1, L)
    b3 = p_ref[r + 1:r + 2, 0:L].astype(jnp.float32)      # (1, L)
    b1 = p_ref[r + 2:r + 3, :].astype(jnp.float32)        # (1, L2)
    b2 = p_ref[r + 3:r + 4, :].astype(jnp.float32)        # (1, L2)
    mdt = w1.dtype                                        # MXU operand dtype

    inv_n = 1.0 / N

    # ---- BatchNorm1d(D, affine=True), training stats, per instance (per lane) -
    mean = jnp.sum(x, axis=1, keepdims=True) * inv_n      # (G, 1, L)
    ex2 = jnp.sum(x * x, axis=1, keepdims=True) * inv_n
    var = jnp.maximum(ex2 - mean * mean, 0.0)             # clamp: guard rsqrt
    scale = gamma[None] * jax.lax.rsqrt(var + EPS)
    shift = beta[None] - mean * scale
    h = x * scale + shift                                 # (G, N, L)

    # ---- merge instance & row axes: one matmul with M = G*N -------------------
    M = G * N
    x2 = x.reshape(M, L)
    h = h.reshape(M, L)

    def seq(t):
        t = jnp.dot(t.astype(mdt), w1, preferred_element_type=jnp.float32) + b1
        t = jnp.maximum(t, 0.0)
        t = jnp.dot(t.astype(mdt), w2, preferred_element_type=jnp.float32) + b2
        t = jnp.maximum(t, 0.0)
        return jnp.dot(t.astype(mdt), w3, preferred_element_type=jnp.float32) + b3

    h = seq(h) + x2
    h = seq(h) + x2

    # ---- self.last: BatchNorm1d(D, affine=False) -> Linear(D, D, bias=False) --
    hg = h.reshape(G, N, L)
    m2 = jnp.sum(hg, axis=1, keepdims=True) * inv_n
    e2 = jnp.sum(hg * hg, axis=1, keepdims=True) * inv_n
    v2 = jnp.maximum(e2 - m2 * m2, 0.0)
    s2 = jax.lax.rsqrt(v2 + EPS)
    hn = (hg * s2 - m2 * s2).reshape(M, L)
    out = jnp.dot(hn.astype(mdt), wl, preferred_element_type=jnp.float32)
    out_ref[...] = out.reshape(G, N, L).astype(out_ref.dtype)


def pack_params(p, D, LP, dtype):
    """Pack the 10 parameter arrays into ONE slab of width 2*LP*D.

    Weights are made block-diagonal (kron with I_LP) so LP lane-packed
    instances never mix; vectors are tiled LP times along lanes.
    """
    L = LP * D
    L2 = 2 * L
    eye = jnp.eye(LP, dtype=jnp.float32)
    bd = lambda w: jnp.kron(eye, w)
    tl = lambda v: jnp.tile(v, (1, LP))

    w1 = bd(p["w1"])                                       # (L,  L2)
    w2 = bd(p["w2"])                                       # (L2, L2)
    w3 = bd(p["w3"])                                       # (L2, L)
    wl = bd(p["wl"])                                       # (L,  L)
    right = jnp.concatenate([wl, jnp.zeros((L2 - L, L), jnp.float32)], axis=0)
    blk3 = jnp.concatenate([w3, right], axis=1)            # (L2, L2)

    row_gb = jnp.concatenate([tl(p["gamma"]), tl(p["beta"])], axis=1)           # (1, L2)
    row_b3 = jnp.concatenate([tl(p["b3"]), jnp.zeros((1, L), jnp.float32)], axis=1)
    vec = jnp.concatenate([row_gb, row_b3, tl(p["b1"]), tl(p["b2"])], axis=0)   # (4, L2)

    slab = jnp.concatenate([w1, w2, blk3, vec], axis=0)
    pad = (-slab.shape[0]) % 16                            # sublane-tile align (f32 & bf16)
    if pad:
        slab = jnp.concatenate([slab, jnp.zeros((pad, L2), jnp.float32)], axis=0)
    return slab.astype(dtype)


def net_forward(x, params, *, block_groups=None, use_bf16=False):
    """x: (B, N, D) stack of independent instances, or a single (N, D) instance."""
    squeeze = (x.ndim == 2)
    if squeeze:
        x = x[None]
    B, N, D = x.shape

    # Lane packing factor: D=32 -> 4 instances share the 128-lane axis.
    LP = 128 // D if (D <= 128 and 128 % D == 0) else 1
    L = LP * D

    g_total = pl.cdiv(B, LP)
    if block_groups is None:
        # keep the activation block <= ~2 MiB (tiny vs every scoped-VMEM default)
        by_vmem = max(1, (2 << 20) // (N * L * 4))
        block_groups = max(1, min(g_total, 64, by_vmem))
        if g_total >= 2:
            # keep >= 2 grid steps so both v7x TensorCores get work
            # (costs one ~0.35 us step on 1-TC v5e/v6e — negligible).
            block_groups = max(1, min(block_groups, pl.cdiv(g_total, 2)))
    num_steps = pl.cdiv(g_total, block_groups)
    g_pad = num_steps * block_groups
    b_pad = g_pad * LP

    if b_pad != B:                                         # tail padding (discarded)
        x = jnp.concatenate([x, jnp.zeros((b_pad - B, N, D), x.dtype)], axis=0)
    # (B_pad, N, D) -> (G_pad, N, LP*D); instance i of group g sits in lanes [i*D,(i+1)*D)
    xg = x.reshape(g_pad, LP, N, D).transpose(0, 2, 1, 3).reshape(g_pad, N, L)

    slab = pack_params(params, D, LP,
                       jnp.bfloat16 if use_bf16 else jnp.float32)

    kernel = functools.partial(net_kernel, D=D, LP=LP)
    vmem = pltpu.MemorySpace.VMEM

    out = pl.pallas_call(
        kernel,
        out_shape=jax.ShapeDtypeStruct((g_pad, N, L), jnp.float32),
        grid=(num_steps,),
        in_specs=[
            pl.BlockSpec((block_groups, N, L), lambda g: (g, 0, 0), memory_space=vmem),
            # constant index_map -> single parameter slab stays VMEM-resident
            pl.BlockSpec(slab.shape, lambda g: (0, 0), memory_space=vmem),
        ],
        out_specs=pl.BlockSpec((block_groups, N, L), lambda g: (g, 0, 0),
                               memory_space=vmem),
        compiler_params=pltpu.CompilerParams(
            dimension_semantics=("parallel",)),            # shards steps across TCs on v7x
    )(xg, slab)

    y = out.reshape(g_pad, N, LP, D).transpose(0, 2, 1, 3).reshape(b_pad, N, D)[:B]
    return y[0] if squeeze else y


def init_params(key, D):
    ks = jax.random.split(key, 8)
    s_in = lambda n: 1.0 / jnp.sqrt(n)
    return {
        # BatchNorm1d(D) affine params (deterministic, non-trivial)
        "gamma": 1.0 + 0.1 * jax.random.normal(ks[0], (1, D), jnp.float32),
        "beta": 0.1 * jax.random.normal(ks[1], (1, D), jnp.float32),
        # seq: Linear(D,2D), Linear(2D,2D), Linear(2D,D)  (weights stored (in,out))
        "w1": jax.random.normal(ks[2], (D, 2 * D), jnp.float32) * s_in(D),
        "b1": 0.01 * jax.random.normal(ks[3], (1, 2 * D), jnp.float32),
        "w2": jax.random.normal(ks[4], (2 * D, 2 * D), jnp.float32) * s_in(2 * D),
        "b2": 0.01 * jax.random.normal(ks[5], (1, 2 * D), jnp.float32),
        "w3": jax.random.normal(ks[6], (2 * D, D), jnp.float32) * s_in(2 * D),
        "b3": jnp.zeros((1, D), jnp.float32),
        # last: Linear(D, D, bias=False)
        "wl": jax.random.normal(ks[7], (D, D), jnp.float32) * s_in(D),
    }


def net_reference(x, p):
    # pure-JAX reference for one (N, D) instance (train-mode BN, batch stats)
    mean = jnp.mean(x, axis=0, keepdims=True)
    var = jnp.mean((x - mean) ** 2, axis=0, keepdims=True)
    h = (x - mean) / jnp.sqrt(var + EPS) * p["gamma"] + p["beta"]

    def seq(t):
        t = jnp.maximum(t @ p["w1"] + p["b1"], 0.0)
        t = jnp.maximum(t @ p["w2"] + p["b2"], 0.0)
        return t @ p["w3"] + p["b3"]

    h = seq(h) + x
    h = seq(h) + x
    m2 = jnp.mean(h, axis=0, keepdims=True)
    v2 = jnp.mean((h - m2) ** 2, axis=0, keepdims=True)
    hn = (h - m2) / jnp.sqrt(v2 + EPS)
    return hn @ p["wl"]


if __name__ == "__main__":
    B, N, D = 16, 8, 32   # 16 independent instances, batch=8, D_ode_dim=32
    key = jax.random.PRNGKey(0)
    kx, kp = jax.random.split(key)
    x = jax.random.normal(kx, (B, N, D), jnp.float32)
    params = init_params(kp, D)

    ref = jnp.stack([net_reference(x[b], params) for b in range(B)])

    # f32 path (default): tight tolerance
    out = jax.block_until_ready(net_forward(x, params))
    assert out.shape == (B, N, D)
    assert jnp.allclose(out, ref, rtol=1e-4, atol=1e-4), \
        float(jnp.max(jnp.abs(out - ref)))

    # B not divisible by the lane-pack factor -> exercises tail padding
    out5 = jax.block_until_ready(net_forward(x[:5], params))
    assert jnp.allclose(out5, ref[:5], rtol=1e-4, atol=1e-4)

    # single-instance (2-D input) convenience path
    out2d = jax.block_until_ready(net_forward(x[0], params))
    assert jnp.allclose(out2d, ref[0], rtol=1e-4, atol=1e-4)

    # optional bf16 MXU-operand path (f32 accumulation / BN math): looser tolerance
    out_bf16 = jax.block_until_ready(net_forward(x, params, use_bf16=True))
    assert float(jnp.max(jnp.abs(out_bf16 - ref))) < 0.25

    print("KERNEL_OK")
</pallas_src>

<mosaic_0001>
module attributes {stable_mosaic.version = 11 : i64} {
  func.func @net_kernel(%arg0: i32, %arg1: memref<2x8x128xf32, #tpu.memory_space<vmem>>, %arg2: memref<656x256xf32, #tpu.memory_space<vmem>>, %arg3: memref<2x8x128xf32, #tpu.memory_space<vmem>>) attributes {dimension_semantics = [#tpu.dimension_semantics<parallel>], iteration_bounds = array<i64: 2>, scalar_prefetch = 0 : i64, scratch_operands = 0 : i64, tpu.core_type = #tpu.core_type<tc>, window_params = [{transform_indices = @transform_0, window_bounds = array<i64: 2, 8, 128>}, {pipeline_mode = #tpu.pipeline_mode<synchronous>, transform_indices = @transform_1, window_bounds = array<i64: 656, 256>}, {transform_indices = @transform_2, window_bounds = array<i64: 2, 8, 128>}]} {
    %c0 = arith.constant 0 : index
    %c0_0 = arith.constant 0 : index
    %c0_1 = arith.constant 0 : index
    %0 = vector.load %arg1[%c0, %c0_0, %c0_1] : memref<2x8x128xf32, #tpu.memory_space<vmem>>, vector<2x8x128xf32>
    %c0_2 = arith.constant 0 : index
    %c0_3 = arith.constant 0 : index
    %1 = vector.load %arg2[%c0_2, %c0_3] : memref<656x256xf32, #tpu.memory_space<vmem>>, vector<128x256xf32>
    %c128 = arith.constant 128 : index
    %c0_4 = arith.constant 0 : index
    %2 = vector.load %arg2[%c128, %c0_4] : memref<656x256xf32, #tpu.memory_space<vmem>>, vector<256x256xf32>
    %c384 = arith.constant 384 : index
    %c0_5 = arith.constant 0 : index
    %3 = vector.load %arg2[%c384, %c0_5] : memref<656x256xf32, #tpu.memory_space<vmem>>, vector<256x128xf32>
    %c384_6 = arith.constant 384 : index
    %c128_7 = arith.constant 128 : index
    %4 = vector.load %arg2[%c384_6, %c128_7] : memref<656x256xf32, #tpu.memory_space<vmem>>, vector<128x128xf32>
    %c640 = arith.constant 640 : index
    %c0_8 = arith.constant 0 : index
    %5 = vector.load %arg2[%c640, %c0_8] : memref<656x256xf32, #tpu.memory_space<vmem>>, vector<1x128xf32>
    %c640_9 = arith.constant 640 : index
    %c128_10 = arith.constant 128 : index
    %6 = vector.load %arg2[%c640_9, %c128_10] : memref<656x256xf32, #tpu.memory_space<vmem>>, vector<1x128xf32>
    %c641 = arith.constant 641 : index
    %c0_11 = arith.constant 0 : index
    %7 = vector.load %arg2[%c641, %c0_11] : memref<656x256xf32, #tpu.memory_space<vmem>>, vector<1x128xf32>
    %c642 = arith.constant 642 : index
    %c0_12 = arith.constant 0 : index
    %8 = vector.load %arg2[%c642, %c0_12] : memref<656x256xf32, #tpu.memory_space<vmem>>, vector<1x256xf32>
    %c643 = arith.constant 643 : index
    %c0_13 = arith.constant 0 : index
    %9 = vector.load %arg2[%c643, %c0_13] : memref<656x256xf32, #tpu.memory_space<vmem>>, vector<1x256xf32>
    %cst = arith.constant dense<0.000000e+00> : vector<2x128xf32>
    %10 = vector.multi_reduction <add>, %0, %cst [1] : vector<2x8x128xf32> to vector<2x128xf32>
    %11 = vector.shape_cast %10 : vector<2x128xf32> to vector<2x1x128xf32>
    %cst_14 = arith.constant 1.250000e-01 : f32
    %12 = vector.broadcast %cst_14 : f32 to vector<2x1x128xf32>
    %13 = arith.mulf %11, %12 : vector<2x1x128xf32>
    %14 = arith.mulf %0, %0 : vector<2x8x128xf32>
    %cst_15 = arith.constant dense<0.000000e+00> : vector<2x128xf32>
    %15 = vector.multi_reduction <add>, %14, %cst_15 [1] : vector<2x8x128xf32> to vector<2x128xf32>
    %16 = vector.shape_cast %15 : vector<2x128xf32> to vector<2x1x128xf32>
    %cst_16 = arith.constant 1.250000e-01 : f32
    %17 = vector.broadcast %cst_16 : f32 to vector<2x1x128xf32>
    %18 = arith.mulf %16, %17 : vector<2x1x128xf32>
    %19 = arith.mulf %13, %13 : vector<2x1x128xf32>
    %20 = arith.subf %18, %19 : vector<2x1x128xf32>
    %cst_17 = arith.constant 0.000000e+00 : f32
    %21 = vector.broadcast %cst_17 : f32 to vector<2x1x128xf32>
    %22 = arith.maximumf %20, %21 : vector<2x1x128xf32>
    %23 = vector.shape_cast %5 : vector<1x128xf32> to vector<1x1x128xf32>
    %cst_18 = arith.constant 9.99999974E-6 : f32
    %24 = vector.broadcast %cst_18 : f32 to vector<2x1x128xf32>
    %25 = arith.addf %22, %24 : vector<2x1x128xf32>
    %26 = math.rsqrt %25 : vector<2x1x128xf32>
    %27 = vector.broadcast %23 : vector<1x1x128xf32> to vector<2x1x128xf32>
    %28 = arith.mulf %27, %26 : vector<2x1x128xf32>
    %29 = vector.shape_cast %6 : vector<1x128xf32> to vector<1x1x128xf32>
    %30 = arith.mulf %13, %28 : vector<2x1x128xf32>
    %31 = vector.broadcast %29 : vector<1x1x128xf32> to vector<2x1x128xf32>
    %32 = arith.subf %31, %30 : vector<2x1x128xf32>
    %33 = vector.broadcast %28 : vector<2x1x128xf32> to vector<2x8x128xf32>
    %34 = arith.mulf %0, %33 : vector<2x8x128xf32>
    %35 = vector.broadcast %32 : vector<2x1x128xf32> to vector<2x8x128xf32>
    %36 = arith.addf %34, %35 : vector<2x8x128xf32>
    %37 = vector.shape_cast %0 : vector<2x8x128xf32> to vector<16x128xf32>
    %38 = vector.shape_cast %36 : vector<2x8x128xf32> to vector<16x128xf32>
    %cst_19 = arith.constant dense<0.000000e+00> : vector<16x256xf32>
    %39 = tpu.matmul %38, %1, %cst_19 {dimension_numbers = #tpu.dot_dimension_numbers<[1], [0], [0], [1], [0, 0, 1, 1], [], []>} : vector<16x128xf32>, vector<128x256xf32>, vector<16x256xf32> -> vector<16x256xf32>
    %40 = vector.broadcast %8 : vector<1x256xf32> to vector<16x256xf32>
    %41 = arith.addf %39, %40 : vector<16x256xf32>
    %cst_20 = arith.constant 0.000000e+00 : f32
    %42 = vector.broadcast %cst_20 : f32 to vector<16x256xf32>
    %43 = arith.maximumf %41, %42 : vector<16x256xf32>
    %cst_21 = arith.constant dense<0.000000e+00> : vector<16x256xf32>
    %44 = tpu.matmul %43, %2, %cst_21 {dimension_numbers = #tpu.dot_dimension_numbers<[1], [0], [0], [1], [0, 0, 1, 1], [], []>} : vector<16x256xf32>, vector<256x256xf32>, vector<16x256xf32> -> vector<16x256xf32>
    %45 = vector.broadcast %9 : vector<1x256xf32> to vector<16x256xf32>
    %46 = arith.addf %44, %45 : vector<16x256xf32>
    %cst_22 = arith.constant 0.000000e+00 : f32
    %47 = vector.broadcast %cst_22 : f32 to vector<16x256xf32>
    %48 = arith.maximumf %46, %47 : vector<16x256xf32>
    %cst_23 = arith.constant dense<0.000000e+00> : vector<16x128xf32>
    %49 = tpu.matmul %48, %3, %cst_23 {dimension_numbers = #tpu.dot_dimension_numbers<[1], [0], [0], [1], [0, 0, 1, 1], [], []>} : vector<16x256xf32>, vector<256x128xf32>, vector<16x128xf32> -> vector<16x128xf32>
    %50 = vector.broadcast %7 : vector<1x128xf32> to vector<16x128xf32>
    %51 = arith.addf %49, %50 : vector<16x128xf32>
    %52 = arith.addf %51, %37 : vector<16x128xf32>
    %cst_24 = arith.constant dense<0.000000e+00> : vector<16x256xf32>
    %53 = tpu.matmul %52, %1, %cst_24 {dimension_numbers = #tpu.dot_dimension_numbers<[1], [0], [0], [1], [0, 0, 1, 1], [], []>} : vector<16x128xf32>, vector<128x256xf32>, vector<16x256xf32> -> vector<16x256xf32>
    %54 = vector.broadcast %8 : vector<1x256xf32> to vector<16x256xf32>
    %55 = arith.addf %53, %54 : vector<16x256xf32>
    %cst_25 = arith.constant 0.000000e+00 : f32
    %56 = vector.broadcast %cst_25 : f32 to vector<16x256xf32>
    %57 = arith.maximumf %55, %56 : vector<16x256xf32>
    %cst_26 = arith.constant dense<0.000000e+00> : vector<16x256xf32>
    %58 = tpu.matmul %57, %2, %cst_26 {dimension_numbers = #tpu.dot_dimension_numbers<[1], [0], [0], [1], [0, 0, 1, 1], [], []>} : vector<16x256xf32>, vector<256x256xf32>, vector<16x256xf32> -> vector<16x256xf32>
    %59 = vector.broadcast %9 : vector<1x256xf32> to vector<16x256xf32>
    %60 = arith.addf %58, %59 : vector<16x256xf32>
    %cst_27 = arith.constant 0.000000e+00 : f32
    %61 = vector.broadcast %cst_27 : f32 to vector<16x256xf32>
    %62 = arith.maximumf %60, %61 : vector<16x256xf32>
    %cst_28 = arith.constant dense<0.000000e+00> : vector<16x128xf32>
    %63 = tpu.matmul %62, %3, %cst_28 {dimension_numbers = #tpu.dot_dimension_numbers<[1], [0], [0], [1], [0, 0, 1, 1], [], []>} : vector<16x256xf32>, vector<256x128xf32>, vector<16x128xf32> -> vector<16x128xf32>
    %64 = vector.broadcast %7 : vector<1x128xf32> to vector<16x128xf32>
    %65 = arith.addf %63, %64 : vector<16x128xf32>
    %66 = arith.addf %65, %37 : vector<16x128xf32>
    %67 = vector.shape_cast %66 : vector<16x128xf32> to vector<2x8x128xf32>
    %cst_29 = arith.constant dense<0.000000e+00> : vector<2x128xf32>
    %68 = vector.multi_reduction <add>, %67, %cst_29 [1] : vector<2x8x128xf32> to vector<2x128xf32>
    %69 = vector.shape_cast %68 : vector<2x128xf32> to vector<2x1x128xf32>
    %cst_30 = arith.constant 1.250000e-01 : f32
    %70 = vector.broadcast %cst_30 : f32 to vector<2x1x128xf32>
    %71 = arith.mulf %69, %70 : vector<2x1x128xf32>
    %72 = arith.mulf %67, %67 : vector<2x8x128xf32>
    %cst_31 = arith.constant dense<0.000000e+00> : vector<2x128xf32>
    %73 = vector.multi_reduction <add>, %72, %cst_31 [1] : vector<2x8x128xf32> to vector<2x128xf32>
    %74 = vector.shape_cast %73 : vector<2x128xf32> to vector<2x1x128xf32>
    %cst_32 = arith.constant 1.250000e-01 : f32
    %75 = vector.broadcast %cst_32 : f32 to vector<2x1x128xf32>
    %76 = arith.mulf %74, %75 : vector<2x1x128xf32>
    %77 = arith.mulf %71, %71 : vector<2x1x128xf32>
    %78 = arith.subf %76, %77 : vector<2x1x128xf32>
    %cst_33 = arith.constant 0.000000e+00 : f32
    %79 = vector.broadcast %cst_33 : f32 to vector<2x1x128xf32>
    %80 = arith.maximumf %78, %79 : vector<2x1x128xf32>
    %cst_34 = arith.constant 9.99999974E-6 : f32
    %81 = vector.broadcast %cst_34 : f32 to vector<2x1x128xf32>
    %82 = arith.addf %80, %81 : vector<2x1x128xf32>
    %83 = math.rsqrt %82 : vector<2x1x128xf32>
    %84 = vector.broadcast %83 : vector<2x1x128xf32> to vector<2x8x128xf32>
    %85 = arith.mulf %67, %84 : vector<2x8x128xf32>
    %86 = arith.mulf %71, %83 : vector<2x1x128xf32>
    %87 = vector.broadcast %86 : vector<2x1x128xf32> to vector<2x8x128xf32>
    %88 = arith.subf %85, %87 : vector<2x8x128xf32>
    %89 = vector.shape_cast %88 : vector<2x8x128xf32> to vector<16x128xf32>
    %cst_35 = arith.constant dense<0.000000e+00> : vector<16x128xf32>
    %90 = tpu.matmul %89, %4, %cst_35 {dimension_numbers = #tpu.dot_dimension_numbers<[1], [0], [0], [1], [0, 0, 1, 1], [], []>} : vector<16x128xf32>, vector<128x128xf32>, vector<16x128xf32> -> vector<16x128xf32>
    %91 = vector.shape_cast %90 : vector<16x128xf32> to vector<2x8x128xf32>
    %c0_36 = arith.constant 0 : index
    %c0_37 = arith.constant 0 : index
    %c0_38 = arith.constant 0 : index
    %92 = vector.load %arg3[%c0_36, %c0_37, %c0_38] : memref<2x8x128xf32, #tpu.memory_space<vmem>>, vector<2x8x128xf32>
    tpu.vector_store %arg3[%c0_36, %c0_37, %c0_38], %91 {strides = array<i32>} : memref<2x8x128xf32, #tpu.memory_space<vmem>>, vector<2x8x128xf32>,
    return
  }
  func.func @transform_0(%arg0: i32) -> (i32, i32, i32) {
    %c0_i32 = arith.constant 0 : i32
    %c0_i32_0 = arith.constant 0 : i32
    %c0_i32_1 = arith.constant 0 : i32
    return %arg0, %c0_i32, %c0_i32_0 : i32, i32, i32
  }
  func.func @transform_1(%arg0: i32) -> (i32, i32) {
    %c0_i32 = arith.constant 0 : i32
    %c0_i32_0 = arith.constant 0 : i32
    %c0_i32_1 = arith.constant 0 : i32
    return %c0_i32, %c0_i32_0 : i32, i32
  }
  func.func @transform_2(%arg0: i32) -> (i32, i32, i32) {
    %c0_i32 = arith.constant 0 : i32
    %c0_i32_0 = arith.constant 0 : i32
    %c0_i32_1 = arith.constant 0 : i32
    return %arg0, %c0_i32, %c0_i32_0 : i32, i32, i32
  }
}

</mosaic_0001>

<bundles_post_ra>
// kernel: tpu_custom_call.1
= control target key start
LH: loop header
LB: loop body
LE: loop exit
PB: predicated region body
PF: predicated region fallthrough
CT: control target
= control target key end

     0   :  { %7 = vsyncpa [#allocation3], 0  ;;  %s2303_s0 = inlined_call_operand.hbm [shape: f32[4,8,128], index: 0, kind: input, shape index: {}]   ;;  %s2304_s1 = inlined_call_operand.hbm [shape: f32[656,256], index: 1, kind: input, shape index: {}]   ;;  %s2305_s2 = inlined_call_operand.hbm [shape: f32[4,8,128], index: 2, kind: output, shape index: {}]  }
   0x1   :  { %9 = vsyncpa [#allocation3 + $0x1], 0 }
   0x2   :  { %10 = vsyncpa [#allocation6], 0 }
   0x3   :  { %11 = vsyncpa [#allocation4], 0 }
   0x4   :  { %13 = vsyncpa [#allocation4 + $0x1], 0  ;;  %s1764_s9 = smov 0   ;;  %s1766_s10 = smov 0  }
   0x5   :  { %s1768_s11 = smov 0   ;;  %s1770_s12 = smov 0  }
   0x6 LB: > { %s1785_s13 = sadd.s32 4294967295, %s1737_s12   ;;  %s1102_s14 = sadd.s32 4294967294, %s1737_s12   ;;  %s1737_s12 = sphi %s1770_s12, %s2374_s12   ;;  %s1733_s11 = sphi %s1768_s11, %s2373_s11   ;;  %s1729_s10 = sphi %s1766_s10, %s2372_s10   ;;  %s1725_s9 = sphi %s1764_s9, %s2371_s9  }
   0x7   : > { %p39_p0 = scmp.ne.s32.totalorder %s1729_s10, %s1725_s9  ;;  %p2306_p1 = scmp.eq.s32.totalorder %s1785_s13, 0 }
   0x8   : > { %p90_p3 = scmp.eq.s32.totalorder %s1102_s14, 1  ;;  %p1103_p5 = scmp.ge.s32.totalorder %s1737_s12, 1 }
   0x9   : > { %p1794_p4 = por %p2306_p1, %p39_p0  ;;  %p97_p7 = scmp.lt.s32.totalorder %s1737_s12, 3 }
   0xa   : > { %p1799_p6 = por %p90_p3, %p39_p0  ;;  %s1739_s18 = smov [#allocation5]  }
   0xb   : > { %s2328_s15 = scalar_select %p1794_p4, 1, 0 }
   0xc   : > { %s2329_s16 = scalar_select %p1799_p6, 1, 0 }
   0xd   : > { %p1804_p8 = pnand %p1103_p5, %p97_p7  ;;  %s109_s19 = sshll.u32 %s1739_s18, 4  ;;  %s1808_s19 = int_to_ptr.vmem [resolvable:$true] %s109_s19 }
   0xe   : > { %s1820_s21 = sadd.s32 1, %s1737_s12   ;;  %s26_s22 = sadd.s32 1, %s1733_s11 }
   0xf   : > { %s2330_s17 = scalar_select %p1804_p8, 1, 0 }
  0x10   : > { %p1545_p9 = pneg %p1804_p8  ;;  %s23_s23 = ssub.s32 %s1737_s12, %s1820_s21 }
  0x11   : > { %s1609_s26 = scalar_lea.hbm %s2304_s1, 20992 }
  0x12   : > { %p1815_p11 = pnand %p1545_p9, %p2306_p1  ;;  %p1610_p12 = scmp.ne.s32.totalorder %s2304_s1, %s1609_s26 }
  0x13   : > { %p1616_p5 = scmp.lt.u32.totalorder %s1609_s26, %s2304_s1 }
  0x14   : > { %p1611_p13 = pneg %p1815_p11 }
  0x16   : > { %p1612_p0 = pnand %p1611_p13, %p1610_p12 }
  0x18   : > { %p1613_p3 = pneg %p1612_p0 }
  0x1a   : > { %p1618_p7 = pnand %p1616_p5, %p1613_p3 }
  0x1c   : > { %1621 = shalt.err (!%p1618_p7)
}
  0x1d   : > { %s1622_s3 = scalar_lea.vmem %s1808_s19, 20992  ;;  %p1630_p2 = scmp.lt.s32.totalorder %s1808_s19, %s1808_s19 }
  0x1e   : > { %p1623_p9 = scmp.ne.s32.totalorder %s1808_s19, %s1622_s3  ;;  %p1631_p6 = scmp.lt.s32.totalorder %s1622_s3, %s1622_s3 }
  0x20   : > { %p1625_p10 = pnand %p1623_p9, %p1611_p13  ;;  %p1632_p4 = por %p1631_p6, %p1630_p2 }
  0x22   : > { %p1626_p1 = pneg %p1625_p10 }
  0x24   : > { %p1633_p8 = pnand %p1632_p4, %p1626_p1 }
  0x26   : > { %1636 = shalt.err (!%p1633_p8)
}
  0x27   : > { %s1740_s4 = smov 256   ;;  %s1741_s5 = smov 16  }
  0x28   : > { %1548 = dma.hbm_to_vmem [thread:$0]  (!%p1815_p11), %s2304_s1, 20992, %s1808_s19, [#allocation6], %s1740_s4, %s1740_s4, %s1741_s5  }
  0x29   : > { %p24_p2 = scmp.eq.s32.totalorder %s23_s23, 0  ;;  %p33_p1 = scmp.ne.s32.totalorder %s1733_s11, %s1729_s10 }
  0x2a   : > { %p34_p4 = scmp.eq.s32.totalorder %s1737_s12, 0  ;;  %p1558_p6 = scmp.lt.s32.totalorder %s1737_s12, 2 }
  0x2b   : > { %s1851_s8 = scalar_select %p24_p2, %s1733_s11, %s26_s22  }
  0x2c   : > { %p35_p8 = por %p34_p4, %p33_p1  ;;  %p2332_p10 = scmp.eq.s32.totalorder %s1785_s13, 1 }
  0x2d   : > { %s123_s18 = sand.u32 1, %s1733_s11   ;;  %s1118_s24 = sshll.u32 %s1737_s12, 8 }
  0x2e   : > { %p1855_p12 = por %p2332_p10, %p33_p1  ;;  %s1106_s25 = sshll.u32 %s123_s18, 4 }
  0x2f   : > { %s1864_s27 = scalar_lea.hbm %s2303_s0, %s1118_s24  ;;  %s127_s19 = scalar_lea.vmem [#allocation2], %s1106_s25 }
  0x30   : > { %s134_s22 = sshll.u32 %s127_s19, 4  ;;  %p1866_p11 = pnand %p1558_p6, %p35_p8  ;;  %s1870_s22 = int_to_ptr.vmem [resolvable:$true] %s134_s22 }
  0x31   : > { %s1872_s28 = scalar_lea.sflag [#allocation3], %s123_s18  ;;  %s1637_s29 = scalar_lea.hbm %s1864_s27, 256 }
  0x32   : > { %p1638_p13 = scmp.ne.s32.totalorder %s1864_s27, %s1637_s29  ;;  %p1639_p0 = pneg %p1866_p11 }
  0x33   : > { %s1642_s4 = scalar_lea.hbm %s2303_s0, 512  ;;  %p1643_p7 = scmp.lt.u32.totalorder %s1864_s27, %s2303_s0 }
  0x34   : > { %p1640_p3 = pnand %p1639_p0, %p1638_p13  ;;  %p1644_p9 = scmp.lt.u32.totalorder %s1642_s4, %s1637_s29 }
  0x35   : > { %p1646_p1 = scmp.lt.u32.totalorder %s1637_s29, %s1864_s27 }
  0x36   : > { %p1641_p5 = pneg %p1640_p3  ;;  %p1645_p2 = por %p1644_p9, %p1643_p7 }
  0x38   : > { %p1647_p4 = por %p1646_p1, %p1645_p2 }
  0x3a   : > { %p1648_p6 = pnand %p1647_p4, %p1641_p5 }
  0x3c   : > { %1651 = shalt.err (!%p1648_p6)
}
  0x3d   : > { %s1652_s7 = scalar_lea.vmem %s1870_s22, 256  ;;  %s1742_s18 = smov [#allocation2]  }
  0x3e   : > { %p1653_p8 = scmp.ne.s32.totalorder %s1870_s22, %s1652_s7  ;;  %s1657_s24 = sshll.u32 %s1742_s18, 4  ;;  %s1658_s24 = int_to_ptr.vmem [resolvable:$false] %s1657_s24 }
  0x3f   : > { %s1659_s25 = scalar_lea.vmem %s1658_s24, 512  ;;  %p1660_p3 = scmp.lt.s32.totalorder %s1870_s22, %s1658_s24 }
  0x40   : > { %p1655_p10 = pnand %p1653_p8, %p1639_p0  ;;  %p1661_p7 = scmp.lt.s32.totalorder %s1659_s25, %s1652_s7 }
  0x42   : > { %p1656_p13 = pneg %p1655_p10  ;;  %p1662_p9 = por %p1661_p7, %p1660_p3 }
  0x44   : > { %p1663_p2 = pnand %p1662_p9, %p1656_p13 }
  0x46   : > { %1666 = shalt.err (!%p1663_p2)
}
  0x47   : > { %s1743_s20 = smov 128   ;;  %s1744_s26 = smov 8  }
  0x48   : > { %1552 = dma.hbm_to_vmem [thread:$0]  (!%p1866_p11), %s1864_s27, 256, %s1870_s22, %s1872_s28, %s1743_s20, %s1743_s20, %s1744_s26  }
  0x49   : > { %p2335_p0 = scmp.ne.s32.totalorder %s2330_s17, 0 }
  0x4b   : > { %146 = sbr.rel (%p2335_p0) target bundleno = 1716 (0x6b4), region = 28 }
  0x52   : > { %s1903_s19 = sand.u32 1, %s1729_s10   ;;  %p2336_p5 = scmp.ne.s32.totalorder %s2328_s15, 0 }
  0x53   : > { %s1110_s29 = sshll.u32 %s1903_s19, 4  ;;  %s149_s30 = scalar_lea.sflag [#allocation3], %s1903_s19 }
  0x54   : > { %s1909_s3 = scalar_lea.vmem [#allocation2], %s1110_s29 }
  0x55   : > { %1712 = dma.done.wait (%p2336_p5), %s149_s30, 256  }
  0x56   : > { %1714 = vsyncadd (%p2336_p5), %s149_s30, 4294967040  ;;  %p2337_p11 = scmp.eq.s32.totalorder %s1785_s13, 0 }
  0x58   : > { %1716 = dma.done.wait (%p2337_p11), [#allocation6], 20992   ;;  %p2338_p1 = pmov %p2337_p11 }
  0x59   : > { %v2309_v0 = vmov 0.0   ;;  %v182_v1 = vld [vmem:[#allocation5 + $0x8] sm:$0xff]  ;;  %v184_v2 = vld [vmem:[#allocation5 + $0x18] sm:$0xff]  ;;  %v181_v3 = vld [vmem:[#allocation5] sm:$0xff]  ;;  %s176_s15 = scalar_lea.vmem [#allocation7], %s1110_s29  ;;  %s1119_s27 = sshll.u32 %s1785_s13, 8 }
  0x5a   : > { %1718 = vsyncadd (%p2338_p1), [#allocation6], 4294946304  ;;  %457 = vmatprep.mubr.f32.mxu0 %v2309_v0  ;;  %v1920_v4 = vpack.c.bf16 %v184_v2, %v182_v1  ;;  %v183_v5 = vld [vmem:[#allocation5 + $0x10] sm:$0xff]  ;;  %v186_v6 = vld [vmem:[#allocation5 + $0x28] sm:$0xff]  ;;  %s1019_s17 = sshll.u32 %s176_s15, 4  ;;  %s2259_s28 = scalar_lea.hbm %s2305_s2, %s1119_s27  ;;  %s2254_s17 = int_to_ptr.vmem [resolvable:$true] %s1019_s17 }
  0x5b   : > { %v188_v7 = vld [vmem:[#allocation5 + $0x38] sm:$0xff]  ;;  %v1922_v8 = vpack.c.bf16 %v183_v5, %v181_v3  ;;  %v185_v10 = vld [vmem:[#allocation5 + $0x20] sm:$0xff]  ;;  %v187_v11 = vld [vmem:[#allocation5 + $0x30] sm:$0xff]  ;;  %s1006_s4 = scalar_lea.sflag [#allocation4], %s1903_s19  ;;  %s1667_s5 = scalar_lea.vmem %s2254_s17, 256 }
  0x5c   : > { %v1924_v9 = vpack.c.bf16 %v188_v7, %v186_v6  ;;  %v190_v12 = vld [vmem:[#allocation5 + $0x48] sm:$0xff]  ;;  %1250 = vmatprep.subr.bf16.mxu0 %v1920_v4  ;;  %v192_v13 = vld [vmem:[#allocation5 + $0x58] sm:$0xff]  ;;  %v1928_v14 = vpack.c.bf16 %v187_v11, %v185_v10  ;;  %v189_v16 = vld [vmem:[#allocation5 + $0x40] sm:$0xff]  ;;  %p1668_p4 = scmp.ne.s32.totalorder %s2254_s17, %s1667_s5  ;;  %s1746_s13 = smov [#allocation7]  }
  0x5d   : > { %1252 = vmatpush1.bf16.msra.mxu0 %v1922_v8  ;;  %v1931_v15 = vpack.c.bf16 %v192_v13, %v190_v12  ;;  %v191_v17 = vld [vmem:[#allocation5 + $0x50] sm:$0xff]  ;;  %v194_v18 = vld [vmem:[#allocation5 + $0x68] sm:$0xff]  ;;  %v196_v19 = vld [vmem:[#allocation5 + $0x78] sm:$0xff]  ;;  %s1671_s6 = sshll.u32 %s1746_s13, 4  ;;  %s1672_s6 = int_to_ptr.vmem [resolvable:$false] %s1671_s6 }
  0x5e   : > { %1254 = vmatprep.subr.bf16.mxu0 %v1924_v9  ;;  %v1934_v20 = vpack.c.bf16 %v191_v17, %v189_v16  ;;  %v1937_v21 = vpack.c.bf16 %v196_v19, %v194_v18  ;;  %v193_v22 = vld [vmem:[#allocation5 + $0x60] sm:$0xff]  ;;  %v195_v23 = vld [vmem:[#allocation5 + $0x70] sm:$0xff]  ;;  %v198_v24 = vld [vmem:[#allocation5 + $0x88] sm:$0xff]  ;;  %p1669_p6 = pnand %p1668_p4, %p1855_p12  ;;  %s1673_s7 = scalar_lea.vmem %s1672_s6, 512 }
  0x5f   : > { %v200_v25 = vld [vmem:[#allocation5 + $0x98] sm:$0xff]  ;;  %v1940_v26 = vld [vmem:[%s1909_s3] sm:$0xff]  ;;  %v1949_v32 = vpack.c.bf16 %v195_v23, %v193_v22  ;;  %v202_v33 = vld [vmem:[#allocation5 + $0xa8] sm:$0xff]  ;;  %p1674_p10 = scmp.lt.s32.totalorder %s2254_s17, %s1672_s6  ;;  %p1675_p13 = scmp.lt.s32.totalorder %s1673_s7, %s1667_s5 }
  0x60   : > { %2339 = vst [vmem:[#allocation11_spill] sm:$0xff] %v1940_v26  ;;  %v197_v27 = vld [vmem:[#allocation5 + $0x80] sm:$0xff]  ;;  %v199_v28 = vld [vmem:[#allocation5 + $0x90] sm:$0xff]  ;;  %v332_v29 = vrot.slane %v1940_v26, 4  ;;  %v346_v30 = vmul.f32 %v1940_v26, %v1940_v26  ;;  %v1946_v31 = vld [vmem:[%s1909_s3 + $0x8] sm:$0xff]  ;;  %v1955_v40 = vpack.c.bf16 %v200_v25, %v198_v24  ;;  %p1670_p8 = pneg %p1669_p6 }
  0x61   : > { %1256 = vmatpush1.bf16.msra.mxu0 %v1928_v14  ;;  %2340 = vst [vmem:[#allocation12_spill] sm:$0xff] %v1946_v31  ;;  %v204_v34 = vld [vmem:[#allocation5 + $0xb8] sm:$0xff]  ;;  %v338_v35 = vrot.slane %v1946_v31, 4  ;;  %v347_v36 = vmul.f32 %v1946_v31, %v1946_v31  ;;  %v214_v37 = vld [vmem:[#allocation5 + $0x108] sm:$0xff]  ;;  %v213_v39 = vld [vmem:[#allocation5 + $0x100] sm:$0xff]  ;;  %v1967_v57 = vpack.c.bf16 %v199_v28, %v197_v27  ;;  %p1676_p3 = por %p1675_p13, %p1674_p10 }
  0x62   : > { %1258 = vmatprep.subr.bf16.mxu0 %v1931_v15  ;;  %v216_v38 = vld [vmem:[#allocation5 + $0x118] sm:$0xff]  ;;  %v333_v41 = vadd.f32 %v332_v29, %v1940_v26  ;;  %v348_v42 = vrot.slane %v346_v30, 4  ;;  %v215_v44 = vld [vmem:[#allocation5 + $0x110] sm:$0xff]  ;;  %v218_v45 = vld [vmem:[#allocation5 + $0x128] sm:$0xff]  ;;  %v1973_v63 = vpack.c.bf16 %v204_v34, %v202_v33 }
  0x63   : > { %v1958_v43 = vpack.c.bf16 %v216_v38, %v214_v37  ;;  %v220_v46 = vld [vmem:[#allocation5 + $0x138] sm:$0xff]  ;;  %v339_v47 = vadd.f32 %v338_v35, %v1946_v31  ;;  %v354_v48 = vrot.slane %v347_v36, 4  ;;  %v1961_v49 = vpack.c.bf16 %v215_v44, %v213_v39  ;;  %v217_v51 = vld [vmem:[#allocation5 + $0x120] sm:$0xff]  ;;  %v219_v52 = vld [vmem:[#allocation5 + $0x130] sm:$0xff]  ;;  %p1677_p7 = pnand %p1676_p3, %p1670_p8 }
  0x64   : > { %v1963_v50 = vpack.c.bf16 %v220_v46, %v218_v45  ;;  %v222_v53 = vld [vmem:[#allocation5 + $0x148] sm:$0xff]  ;;  %v334_v54 = vrot.slane %v333_v41, 2  ;;  %v349_v55 = vadd.f32 %v348_v42, %v346_v30  ;;  %v224_v56 = vld [vmem:[#allocation5 + $0x158] sm:$0xff]  ;;  %v201_v58 = vld [vmem:[#allocation5 + $0xa0] sm:$0xff]  ;;  %v1970_v62 = vpack.c.bf16 %v219_v52, %v217_v51 }
  0x65   : > { %1260 = vmatpush1.bf16.msra.mxu0 %v1934_v20  ;;  %1282 = vmatprep.subr.bf16.mxu1 %v1958_v43  ;;  %v203_v59 = vld [vmem:[#allocation5 + $0xb0] sm:$0xff]  ;;  %v340_v60 = vrot.slane %v339_v47, 2  ;;  %v355_v61 = vadd.f32 %v354_v48, %v347_v36  ;;  %v206_v1 = vld [vmem:[#allocation5 + $0xc8] sm:$0xff]  ;;  %v1976_v5 = vpack.c.bf16 %v224_v56, %v222_v53  ;;  %v221_v6 = vld [vmem:[#allocation5 + $0x140] sm:$0xff] }
  0x66   : > { %1262 = vmatprep.subr.bf16.mxu0 %v1937_v21  ;;  %1284 = vmatpush1.bf16.msra.mxu1 %v1961_v49  ;;  %v335_v2 = vadd.f32 %v334_v54, %v333_v41  ;;  %v350_v3 = vrot.slane %v349_v55, 2  ;;  %v223_v7 = vld [vmem:[#allocation5 + $0x150] sm:$0xff]  ;;  %v208_v10 = vld [vmem:[#allocation5 + $0xd8] sm:$0xff]  ;;  %v226_v13 = vld [vmem:[#allocation5 + $0x168] sm:$0xff]  ;;  %v1979_v19 = vpack.c.bf16 %v203_v59, %v201_v58 }
  0x67   : > { %1286 = vmatprep.subr.bf16.mxu1 %v1963_v50  ;;  %v341_v11 = vadd.f32 %v340_v60, %v339_v47  ;;  %v356_v12 = vrot.slane %v355_v61, 2  ;;  %v228_v16 = vld [vmem:[#allocation5 + $0x178] sm:$0xff]  ;;  %v205_v22 = vld [vmem:[#allocation5 + $0xc0] sm:$0xff]  ;;  %v207_v23 = vld [vmem:[#allocation5 + $0xd0] sm:$0xff]  ;;  %v1982_v27 = vpack.c.bf16 %v223_v7, %v221_v6  ;;  %v1985_v28 = vpack.c.bf16 %v208_v10, %v206_v1 }
  0x68   : > { %v336_v17 = vrot.slane %v335_v2, 1  ;;  %v351_v18 = vadd.f32 %v350_v3, %v349_v55  ;;  %v210_v29 = vld [vmem:[#allocation5 + $0xe8] sm:$0xff]  ;;  %v1988_v34 = vpack.c.bf16 %v228_v16, %v226_v13  ;;  %v225_v35 = vld [vmem:[#allocation5 + $0x160] sm:$0xff]  ;;  %v227_v36 = vld [vmem:[#allocation5 + $0x170] sm:$0xff]  ;;  %v1993_v46 = vpack.c.bf16 %v207_v23, %v205_v22 }
  0x69   : > { %1264 = vmatpush1.bf16.msra.mxu0 %v1949_v32  ;;  %v342_v24 = vrot.slane %v341_v11, 1  ;;  %v357_v25 = vadd.f32 %v356_v12, %v355_v61  ;;  %v212_v37 = vld [vmem:[#allocation5 + $0xf8] sm:$0xff]  ;;  %v230_v41 = vld [vmem:[#allocation5 + $0x188] sm:$0xff]  ;;  %v209_v47 = vld [vmem:[#allocation5 + $0xe0] sm:$0xff]  ;;  %v1998_v52 = vpack.c.bf16 %v227_v36, %v225_v35 }
  0x6a   : > { %1266 = vmatprep.subr.bf16.mxu0 %v1955_v40  ;;  %1288 = vmatpush1.bf16.msra.mxu1 %v1970_v62  ;;  %v337_v30 = vadd.f32 %v336_v17, %v335_v2  ;;  %v352_v33 = vrot.slane %v351_v18, 1  ;;  %v232_v42 = vld [vmem:[#allocation5 + $0x198] sm:$0xff]  ;;  %v2001_v53 = vpack.c.bf16 %v212_v37, %v210_v29  ;;  %v211_v54 = vld [vmem:[#allocation5 + $0xf0] sm:$0xff]  ;;  %v229_v59 = vld [vmem:[#allocation5 + $0x180] sm:$0xff] }
  0x6b   : > { %1290 = vmatprep.subr.bf16.mxu1 %v1976_v5  ;;  %v343_v38 = vadd.f32 %v342_v24, %v341_v11  ;;  %v358_v39 = vrot.slane %v357_v25, 1  ;;  %v2006_v58 = vpack.c.bf16 %v232_v42, %v230_v41  ;;  %v231_v60 = vld [vmem:[#allocation5 + $0x190] sm:$0xff]  ;;  %v234_v2 = vld [vmem:[#allocation5 + $0x1a8] sm:$0xff]  ;;  %v236_v3 = vld [vmem:[#allocation5 + $0x1b8] sm:$0xff]  ;;  %v2011_v7 = vpack.c.bf16 %v211_v54, %v209_v47 }
  0x6c   : > { %v1990_v44 = vmul.f32 0.125, %v337_v30  ;;  %v353_v45 = vadd.f32 %v352_v33, %v351_v18  ;;  %v2014_v11 = vpack.c.bf16 %v231_v60, %v229_v59  ;;  %v2018_v13 = vpack.c.bf16 %v236_v3, %v234_v2  ;;  %v233_v16 = vld [vmem:[#allocation5 + $0x1a0] sm:$0xff]  ;;  %v235_v17 = vld [vmem:[#allocation5 + $0x1b0] sm:$0xff]  ;;  %v238_v22 = vld [vmem:[#allocation5 + $0x1c8] sm:$0xff] }
  0x6d   : > { %1268 = vmatpush1.bf16.msra.mxu0 %v1967_v57  ;;  %v1995_v48 = vmul.f32 0.125, %v343_v38  ;;  %v359_v51 = vadd.f32 %v358_v39, %v357_v25  ;;  %v240_v23 = vld [vmem:[#allocation5 + $0x1d8] sm:$0xff]  ;;  %v2022_v29 = vpack.c.bf16 %v235_v17, %v233_v16  ;;  %v237_v33 = vld [vmem:[#allocation5 + $0x1c0] sm:$0xff]  ;;  %v239_v35 = vld [vmem:[#allocation5 + $0x1d0] sm:$0xff] }
  0x6e   : > { %1270 = vmatprep.subr.bf16.mxu0 %v1973_v63  ;;  %1292 = vmatpush1.bf16.msra.mxu1 %v1982_v27  ;;  %v360_v55 = vmul.f32 0.125, %v353_v45  ;;  %v362_v56 = vmul.f32 %v1990_v44, %v1990_v44  ;;  %v2025_v30 = vpack.c.bf16 %v240_v23, %v238_v22  ;;  %v242_v36 = vld [vmem:[#allocation5 + $0x1e8] sm:$0xff]  ;;  %v244_v37 = vld [vmem:[#allocation5 + $0x1f8] sm:$0xff]  ;;  %v2028_v38 = vpack.c.bf16 %v239_v35, %v237_v33  ;;  %v241_v41 = vld [vmem:[#allocation5 + $0x1e0] sm:$0xff] }
  0x6f   : > { %1294 = vmatprep.subr.bf16.mxu1 %v1988_v34  ;;  %v361_v61 = vmul.f32 0.125, %v359_v51  ;;  %v363_v1 = vmul.f32 %v1995_v48, %v1995_v48  ;;  %v2031_v39 = vpack.c.bf16 %v244_v37, %v242_v36  ;;  %v243_v42 = vld [vmem:[#allocation5 + $0x1f0] sm:$0xff]  ;;  %v246_v45 = vld [vmem:[#allocation5 + $0x208] sm:$0xff]  ;;  %v248_v47 = vld [vmem:[#allocation5 + $0x218] sm:$0xff] }
  0x70   : > { %v364_v6 = vsub.f32 %v360_v55, %v362_v56  ;;  %v2034_v51 = vpack.c.bf16 %v243_v42, %v241_v41  ;;  %v325_v54 = vld [vmem:[#allocation5 + $0x500] ss:$0 sm:$0xff]  ;;  %v2037_v55 = vpack.c.bf16 %v248_v47, %v246_v45  ;;  %v247_v59 = vld [vmem:[#allocation5 + $0x210] sm:$0xff]  ;;  %v250_v60 = vld [vmem:[#allocation5 + $0x228] sm:$0xff] }
  0x71   : > { %1272 = vmatpush1.bf16.msra.mxu0 %v1979_v19  ;;  %v365_v10 = vsub.f32 %v361_v61, %v363_v1  ;;  %v245_v56 = vld [vmem:[#allocation5 + $0x200] sm:$0xff]  ;;  %v252_v61 = vld [vmem:[#allocation5 + $0x238] sm:$0xff] }
  0x72   : > { %1274 = vmatprep.subr.bf16.mxu0 %v1985_v28  ;;  %1296 = vmatpush1.bf16.msra.mxu1 %v1998_v52  ;;  %v366_v12 = vmax.f32 %v364_v6, 0.0  ;;  %v2040_v6 = vpack.c.bf16 %v247_v59, %v245_v56  ;;  %v2043_v16 = vpack.c.bf16 %v252_v61, %v250_v60  ;;  %v249_v17 = vld [vmem:[#allocation5 + $0x220] sm:$0xff]  ;;  %v260_v56 = vld [vmem:[#allocation5 + $0x278] sm:$0xff] }
  0x73   : > { %1298 = vmatprep.subr.bf16.mxu1 %v2006_v58  ;;  %v367_v18 = vmax.f32 %v365_v10, 0.0  ;;  %v326_v10 = vld [vmem:[#allocation5 + $0x508] ss:$0 sm:$0xff]  ;;  %v253_v45 = vld [vmem:[#allocation5 + $0x240] sm:$0xff] }
  0x74   : > { %v368_v24 = vadd.f32 1e-05, %v366_v12  ;;  %v257_v61 = vld [vmem:[#allocation5 + $0x260] sm:$0xff] }
  0x75   : > { %1276 = vmatpush1.bf16.msra.mxu0 %v1993_v46  ;;  %v369_v25 = vadd.f32 1e-05, %v367_v18  ;;  %v251_v18 = vld [vmem:[#allocation5 + $0x230] sm:$0xff] }
  0x76   : > { %1278 = vmatprep.subr.bf16.mxu0 %v2001_v53  ;;  %1300 = vmatpush1.bf16.msra.mxu1 %v2014_v11  ;;  %1601 = vrsqrt.f32 %v368_v24  ;;  %v254_v24 = vld [vmem:[#allocation5 + $0x248] sm:$0xff]  ;;  %v2050_v37 = vpack.c.bf16 %v251_v18, %v249_v17  ;;  %v261_v17 = vld [vmem:[#allocation5 + $0x280] sm:$0xff]  ;;  %v263_v18 = vld [vmem:[#allocation5 + $0x290] sm:$0xff] }
  0x77   : > { %1302 = vmatprep.subr.bf16.mxu1 %v2018_v13  ;;  %1603 = vrsqrt.f32 %v369_v25  ;;  %v256_v25 = vld [vmem:[#allocation5 + $0x258] sm:$0xff] }
  0x78   : > { %v2053_v42 = vpack.c.bf16 %v256_v25, %v254_v24  ;;  %v2069_v24 = vpack.c.bf16 %v263_v18, %v261_v17  ;;  %v293_v18 = vld [vmem:[#allocation5 + $0x400] sm:$0xff] }
  0x79   : > { %1280 = vmatpush1.bf16.msra.mxu0 %v2011_v7 }
  0x7a   : > { %1304 = vmatpush1.bf16.msra.mxu1 %v2022_v29 }
  0x7b   : > { %1306 = vmatprep.subr.bf16.mxu1 %v2025_v30 }
  0x7e   : > { %1308 = vmatpush1.bf16.msra.mxu1 %v2028_v38 }
  0x7f   : > { %1310 = vmatprep.subr.bf16.mxu1 %v2031_v39 }
  0x80   : > { %v1602_v1 = vpop.eup %1601 }
  0x81   : > { %v1604_v2 = vpop.eup %1603  ;;  %v372_v3 = vmul.f32 %v1602_v1, %v325_v54  ;;  %v259_v1 = vld [vmem:[#allocation5 + $0x270] sm:$0xff] }
  0x82   : > { %1312 = vmatpush1.bf16.msra.mxu1 %v2034_v51  ;;  %v373_v12 = vmul.f32 %v1604_v2, %v325_v54  ;;  %v258_v54 = vld [vmem:[#allocation5 + $0x268] sm:$0xff] }
  0x83   : > { %1314 = vmatprep.subr.bf16.mxu1 %v2037_v55  ;;  %v374_v22 = vmul.f32 %v372_v3, %v1990_v44  ;;  %v378_v23 = vmul.f32 %v372_v3, %v1940_v26  ;;  %v255_v44 = vld [vmem:[#allocation5 + $0x250] sm:$0xff]  ;;  %v2060_v60 = vpack.c.bf16 %v260_v56, %v258_v54  ;;  %v262_v2 = vld [vmem:[#allocation5 + $0x288] sm:$0xff]  ;;  %v264_v3 = vld [vmem:[#allocation5 + $0x298] sm:$0xff] }
  0x84   : > { %v375_v33 = vmul.f32 %v373_v12, %v1995_v48  ;;  %v379_v36 = vmul.f32 %v373_v12, %v1946_v31  ;;  %v2056_v48 = vpack.c.bf16 %v255_v44, %v253_v45  ;;  %v2066_v12 = vpack.c.bf16 %v264_v3, %v262_v2  ;;  %v271_v54 = vld [vmem:[#allocation5 + $0x2d0] sm:$0xff]  ;;  %v273_v2 = vld [vmem:[#allocation5 + $0x2e0] sm:$0xff] }
  0x85   : > { %v376_v35 = vsub.f32 %v326_v10, %v374_v22  ;;  %v266_v22 = vld [vmem:[#allocation5 + $0x2a8] sm:$0xff]  ;;  %v275_v3 = vld [vmem:[#allocation5 + $0x2f0] sm:$0xff]  ;;  %v283_v31 = vld [vmem:[#allocation5 + $0x360] sm:$0xff] }
  0x86   : > { %1316 = vmatpush1.bf16.msra.mxu1 %v2040_v6  ;;  %v377_v41 = vsub.f32 %v326_v10, %v375_v33  ;;  %v2063_v10 = vpack.c.bf16 %v259_v1, %v257_v61  ;;  %v265_v33 = vld [vmem:[#allocation5 + $0x2a0] sm:$0xff]  ;;  %v276_v61 = vld [vmem:[#allocation5 + $0x2f8] sm:$0xff]  ;;  %v2087_v17 = vpack.c.bf16 %v275_v3, %v273_v2  ;;  %v298_v3 = vld [vmem:[#allocation5 + $0x450] sm:$0xff] }
  0x87   : > { %1318 = vmatprep.subr.bf16.mxu1 %v2043_v16  ;;  %v380_v47 = vadd.f32 %v378_v23, %v376_v35  ;;  %v268_v23 = vld [vmem:[#allocation5 + $0x2b8] sm:$0xff]  ;;  %v267_v35 = vld [vmem:[#allocation5 + $0x2b0] sm:$0xff]  ;;  %v297_v2 = vld [vmem:[#allocation5 + $0x440] sm:$0xff] }
  0x88   : > { %v381_v59 = vadd.f32 %v379_v36, %v377_v41  ;;  %v2072_v25 = vpack.c.bf16 %v268_v23, %v266_v22  ;;  %v270_v36 = vld [vmem:[#allocation5 + $0x2c8] sm:$0xff]  ;;  %v272_v41 = vld [vmem:[#allocation5 + $0x2d8] sm:$0xff]  ;;  %v2075_v45 = vpack.c.bf16 %v267_v35, %v265_v33  ;;  %v294_v22 = vld [vmem:[#allocation5 + $0x410] sm:$0xff] }
  0x89   : > { %458 = vmatmul.mubr.f32.vlgmr.msra.gmra.mrb[0].mxu0 %v380_v47  ;;  %v2078_v44 = vpack.c.bf16 %v272_v41, %v270_v36  ;;  %v269_v47 = vld [vmem:[#allocation5 + $0x2c0] sm:$0xff]  ;;  %v2092_v33 = vpack.c.bf16 %v294_v22, %v293_v18  ;;  %v278_v35 = vld [vmem:[#allocation5 + $0x310] sm:$0xff]  ;;  %v2103_v18 = vpack.c.bf16 %v298_v3, %v297_v2 }
  0x8a   : > { %1320 = vmatpush1.bf16.msra.mxu1 %v2050_v37  ;;  %463 = vmatprep.mubr.f32.mxu0 %v2309_v0  ;;  %v2082_v56 = vpack.c.bf16 %v271_v54, %v269_v47  ;;  %v277_v23 = vld [vmem:[#allocation5 + $0x300] sm:$0xff]  ;;  %v296_v41 = vld [vmem:[#allocation5 + $0x430] sm:$0xff] }
  0x8b   : > { %1322 = vmatprep.subr.bf16.mxu1 %v2053_v42  ;;  %v295_v36 = vld [vmem:[#allocation5 + $0x420] sm:$0xff]  ;;  %v2094_v47 = vpack.c.bf16 %v278_v35, %v277_v23  ;;  %1346 = vmatprep.subr.bf16.mxu0 %v2092_v33  ;;  %2344 = vst [vmem:[#allocation16_spill] sm:$0xff] %v2103_v18  ;;  %v282_v0 = vld [vmem:[#allocation5 + $0x350] sm:$0xff] }
  0x8c   : > { %v2096_v54 = vpack.c.bf16 %v296_v41, %v295_v36  ;;  %v281_v22 = vld [vmem:[#allocation5 + $0x340] sm:$0xff]  ;;  %v300_v35 = vld [vmem:[#allocation5 + $0x470] sm:$0xff] }
  0x8d   : > { %464 = vmatmul.mubr.f32.gmra.mrb[2].mxu0 %v381_v59  ;;  %v274_v59 = vld [vmem:[#allocation5 + $0x2e8] sm:$0xff]  ;;  %2341 = vst [vmem:[#allocation13_spill] sm:$0xff] %v2094_v47  ;;  %v299_v23 = vld [vmem:[#allocation5 + $0x460] sm:$0xff]  ;;  %v2106_v36 = vpack.c.bf16 %v282_v0, %v281_v22  ;;  %v304_v22 = vld [vmem:[#allocation5 + $0x4b0] sm:$0xff] }
  0x8e   : > { %1324 = vmatpush1.bf16.msra.mxu1 %v2056_v48  ;;  %v2085_v1 = vpack.c.bf16 %v276_v61, %v274_v59  ;;  %2342 = vst [vmem:[#allocation14_spill] sm:$0xff] %v2096_v54  ;;  %v279_v59 = vld [vmem:[#allocation5 + $0x320] sm:$0xff]  ;;  %v280_v61 = vld [vmem:[#allocation5 + $0x330] sm:$0xff]  ;;  %1348 = vmatpush3.bf16.msra.mxu0 %v2094_v47  ;;  %v2109_v41 = vpack.c.bf16 %v300_v35, %v299_v23 }
  0x8f   : > { %1326 = vmatprep.subr.bf16.mxu1 %v2060_v60  ;;  %1350 = vmatprep.subr.bf16.mxu0 %v2096_v54  ;;  %2345 = vst [vmem:[#allocation17_spill] sm:$0xff] %v2106_v36  ;;  %v284_v47 = vld [vmem:[#allocation5 + $0x370] sm:$0xff]  ;;  %v285_v54 = vld [vmem:[#allocation5 + $0x380] sm:$0xff] }
  0x90   : > { %2346 = vst [vmem:[#allocation18_spill] sm:$0xff] %v2109_v41  ;;  %v2112_v2 = vpack.c.bf16 %v284_v47, %v283_v31  ;;  %v303_v0 = vld [vmem:[#allocation5 + $0x4a0] sm:$0xff]  ;;  %v306_v47 = vld [vmem:[#allocation5 + $0x4d0] sm:$0xff] }
  0x91   : > { %v2121_v35 = vpack.c.bf16 %v304_v22, %v303_v0  ;;  %v305_v31 = vld [vmem:[#allocation5 + $0x4c0] sm:$0xff] }
  0x92   : > { %1328 = vmatpush1.bf16.msra.mxu1 %v2063_v10  ;;  %2347 = vst [vmem:[#allocation19_spill] sm:$0xff] %v2112_v2  ;;  %v329_v22 = vld [vmem:[#allocation5 + $0x502] ss:$8 sm:$0x3] }
  0x93   : > { %1330 = vmatprep.subr.bf16.mxu1 %v2066_v12  ;;  %2350 = vst [vmem:[#allocation22_spill] sm:$0xff] %v2121_v35 }
  0x96   : > { %1332 = vmatpush1.bf16.msra.mxu1 %v2069_v24 }
  0x97   : > { %1334 = vmatprep.subr.bf16.mxu1 %v2072_v25 }
  0x9a   : > { %1336 = vmatpush1.bf16.msra.mxu1 %v2075_v45 }
  0x9b   : > { %1338 = vmatprep.subr.bf16.mxu1 %v2078_v44 }
  0x9e   : > { %1340 = vmatpush1.bf16.msra.mxu1 %v2082_v56 }
  0x9f   : > { %1342 = vmatprep.subr.bf16.mxu1 %v2085_v1 }
  0xa2   : > { %1344 = vmatpush1.bf16.msra.mxu1 %v2087_v17 }
  0xa3   : > { %1410 = vmatprep.subr.bf16.mxu1 %v1958_v43  ;;  %v2100_v43 = vpack.c.bf16 %v280_v61, %v279_v59  ;;  %v301_v59 = vld [vmem:[#allocation5 + $0x480] sm:$0xff]  ;;  %v302_v61 = vld [vmem:[#allocation5 + $0x490] sm:$0xff] }
  0xa4   : > { %v2115_v3 = vpack.c.bf16 %v302_v61, %v301_v59  ;;  %v2127_v61 = vpack.c.bf16 %v306_v47, %v305_v31 }
  0xa5   : > { %2343 = vst [vmem:[#allocation15_spill] sm:$0xff] %v2100_v43  ;;  %1352 = vmatpush3.bf16.msra.mxu0 %v2100_v43  ;;  %v286_v43 = vld [vmem:[#allocation5 + $0x390] sm:$0xff] }
  0xa6   : > { %1354 = vmatprep.subr.bf16.mxu0 %v2103_v18  ;;  %2348 = vst [vmem:[#allocation20_spill] sm:$0xff] %v2115_v3  ;;  %v2118_v23 = vpack.c.bf16 %v286_v43, %v285_v54  ;;  %v287_v18 = vld [vmem:[#allocation5 + $0x3a0] sm:$0xff]  ;;  %2352 = vst [vmem:[#allocation24_spill] sm:$0xff] %v2127_v61  ;;  %v383_v54 = vlaneseq }
  0xa8   : > { %2349 = vst [vmem:[#allocation21_spill] sm:$0xff] %v2118_v23  ;;  %v2131_v43 = vshrl.u32 %v383_v54, 7 }
  0xa9   : > { %1356 = vmatpush3.bf16.msra.mxu0 %v2106_v36  ;;  %v288_v36 = vld [vmem:[#allocation5 + $0x3b0] sm:$0xff] }
  0xaa   : > { %1358 = vmatprep.subr.bf16.mxu0 %v2109_v41  ;;  %v2124_v59 = vpack.c.bf16 %v288_v36, %v287_v18  ;;  %v2327_v0 = vsub.s32 0, %v2131_v43 }
  0xac   : > { %2351 = vst [vmem:[#allocation23_spill] sm:$0xff] %v2124_v59  ;;  %v2137_v18 = vrot.slane %v329_v22, %v2327_v0 }
  0xad   : > { %1360 = vmatpush3.bf16.msra.mxu0 %v2112_v2 }
  0xae   : > { %1362 = vmatprep.subr.bf16.mxu0 %v2115_v3  ;;  %v389_v3 = vsub.s32 1, %v2131_v43 }
  0xb0   : > { %v2141_v36 = vrot.slane %v329_v22, %v389_v3 }
  0xb1   : > { %1364 = vmatpush3.bf16.msra.mxu0 %v2118_v23 }
  0xb2   : > { %1366 = vmatprep.subr.bf16.mxu0 %v2121_v35 }
  0xb5   : > { %1368 = vmatpush3.bf16.msra.mxu0 %v2124_v59 }
  0xb6   : > { %1370 = vmatprep.subr.bf16.mxu0 %v2127_v61 }
 0x15c   : > { %v459_v31 = vpop.f32.mrb[0].mxu0 }
 0x15d   : > { %v460_v47 = vadd.f32 %v459_v31, %v2137_v18  ;;  %v461_v61 = vpop.f32.mrb[1].mxu0 }
 0x15e   : > { %v462_v54 = vadd.f32 %v461_v61, %v2141_v36 }
 0x15f   : > { %v470_v23 = vmax.f32 %v460_v47, 0.0 }
 0x160   : > { %v465_v59 = vpop.f32.mrb[2].mxu0  ;;  %v471_v35 = vmax.f32 %v462_v54, 0.0 }
 0x161   : > { %v466_v2 = vadd.f32 %v465_v59, %v2137_v18  ;;  %v467_v41 = vpop.f32.mrb[3].mxu0 }
 0x162   : > { %v468_v26 = vadd.f32 %v467_v41, %v2141_v36  ;;  %549 = vmatprep.mubr.f32.mxu1 %v471_v35  ;;  %v2367_v41 = vld [vmem:[#allocation23_spill] sm:$0xff] }
 0x163   : > { %550 = vmatmul.mubr.f32.vlgmr.msra.gmra.mrb[0].mxu1 %v470_v23  ;;  %v472_v22 = vmax.f32 %v466_v2, 0.0  ;;  %v2368_v2 = vld [vmem:[#allocation24_spill] sm:$0xff] }
 0x164   : > { %v473_v0 = vmax.f32 %v468_v26, 0.0  ;;  %1412 = vmatpush1.bf16.msra.mxu1 %v1961_v49  ;;  %v289_v26 = vld [vmem:[#allocation5 + $0x3c0] sm:$0xff]  ;;  %v290_v49 = vld [vmem:[#allocation5 + $0x3d0] sm:$0xff] }
 0x165   : > { %1414 = vmatprep.subr.bf16.mxu1 %v1963_v50  ;;  %v2178_v50 = vpack.c.bf16 %v290_v49, %v289_v26 }
 0x166   : > { %555 = vmatprep.mubr.f32.mxu1 %v473_v0 }
 0x167   : > { %556 = vmatmul.mubr.f32.gmra.mrb[2].mxu1 %v472_v22  ;;  %1372 = vmatpush3.bf16.msra.mxu0 %v2178_v50 }
 0x168   : > { %1416 = vmatpush1.bf16.msra.mxu1 %v1970_v62  ;;  %v307_v62 = vld [vmem:[#allocation5 + $0x4e0] sm:$0xff] }
 0x169   : > { %1418 = vmatprep.subr.bf16.mxu1 %v1976_v5  ;;  %v308_v5 = vld [vmem:[#allocation5 + $0x4f0] sm:$0xff] }
 0x16c   : > { %1420 = vmatpush1.bf16.msra.mxu1 %v1982_v27  ;;  %v2181_v27 = vpack.c.bf16 %v308_v5, %v307_v62 }
 0x16d   : > { %1422 = vmatprep.subr.bf16.mxu1 %v1988_v34  ;;  %v291_v34 = vld [vmem:[#allocation5 + $0x3e0] sm:$0xff] }
 0x16e   : > { %1374 = vmatprep.subr.bf16.mxu0 %v2181_v27 }
 0x170   : > { %1424 = vmatpush1.bf16.msra.mxu1 %v1998_v52  ;;  %v292_v52 = vld [vmem:[#allocation5 + $0x3f0] sm:$0xff] }
 0x171   : > { %1426 = vmatprep.subr.bf16.mxu1 %v2006_v58  ;;  %v2183_v58 = vpack.c.bf16 %v292_v52, %v291_v34 }
 0x173   : > { %1376 = vmatpush3.bf16.msra.mxu0 %v2183_v58 }
 0x174   : > { %1428 = vmatpush1.bf16.msra.mxu1 %v2014_v11  ;;  %1378 = vmatprep.subr.bf16.mxu0 %v1920_v4  ;;  %v331_v11 = vld [vmem:[#allocation5 + $0x503] ss:$8 sm:$0x3] }
 0x175   : > { %1430 = vmatprep.subr.bf16.mxu1 %v2018_v13  ;;  %v2353_v13 = vsub.s32 0, %v2131_v43 }
 0x178   : > { %1432 = vmatpush1.bf16.msra.mxu1 %v2022_v29  ;;  %v2190_v29 = vrot.slane %v331_v11, %v2353_v13 }
 0x179   : > { %1434 = vmatprep.subr.bf16.mxu1 %v2025_v30  ;;  %v2194_v30 = vrot.slane %v331_v11, %v389_v3 }
 0x17c   : > { %1436 = vmatpush1.bf16.msra.mxu1 %v2028_v38 }
 0x17d   : > { %1438 = vmatprep.subr.bf16.mxu1 %v2031_v39 }
 0x180   : > { %1440 = vmatpush1.bf16.msra.mxu1 %v2034_v51 }
 0x181   : > { %1442 = vmatprep.subr.bf16.mxu1 %v2037_v55 }
 0x184   : > { %1444 = vmatpush1.bf16.msra.mxu1 %v2040_v6 }
 0x185   : > { %1446 = vmatprep.subr.bf16.mxu1 %v2043_v16 }
 0x188   : > { %1448 = vmatpush1.bf16.msra.mxu1 %v2050_v37 }
 0x189   : > { %1450 = vmatprep.subr.bf16.mxu1 %v2053_v42 }
 0x18c   : > { %1452 = vmatpush1.bf16.msra.mxu1 %v2056_v48 }
 0x18d   : > { %1454 = vmatprep.subr.bf16.mxu1 %v2060_v60 }
 0x190   : > { %1456 = vmatpush1.bf16.msra.mxu1 %v2063_v10 }
 0x191   : > { %1458 = vmatprep.subr.bf16.mxu1 %v2066_v12  ;;  %v2354_v12 = vmov 0.0  }
 0x194   : > { %1460 = vmatpush1.bf16.msra.mxu1 %v2069_v24  ;;  %v2359_v24 = vld [vmem:[#allocation15_spill] sm:$0xff] }
 0x195   : > { %1462 = vmatprep.subr.bf16.mxu1 %v2072_v25  ;;  %v2360_v25 = vld [vmem:[#allocation16_spill] sm:$0xff] }
 0x198   : > { %1464 = vmatpush1.bf16.msra.mxu1 %v2075_v45  ;;  %v2361_v45 = vld [vmem:[#allocation17_spill] sm:$0xff] }
 0x199   : > { %1466 = vmatprep.subr.bf16.mxu1 %v2078_v44  ;;  %v2362_v44 = vld [vmem:[#allocation18_spill] sm:$0xff] }
 0x19c   : > { %1468 = vmatpush1.bf16.msra.mxu1 %v2082_v56  ;;  %v2363_v56 = vld [vmem:[#allocation19_spill] sm:$0xff] }
 0x19d   : > { %1470 = vmatprep.subr.bf16.mxu1 %v2085_v1  ;;  %v2364_v1 = vld [vmem:[#allocation20_spill] sm:$0xff] }
 0x1a0   : > { %1472 = vmatpush1.bf16.msra.mxu1 %v2087_v17  ;;  %v2365_v17 = vld [vmem:[#allocation21_spill] sm:$0xff] }
 0x236   : > { %v551_v38 = vpop.f32.mrb[0].mxu1 }
 0x237   : > { %v552_v39 = vadd.f32 %v551_v38, %v2190_v29  ;;  %v553_v51 = vpop.f32.mrb[1].mxu1  ;;  %v309_v38 = vld [vmem:[#allocation5 + $0x308] sm:$0xff] }
 0x238   : > { %v554_v55 = vadd.f32 %v553_v51, %v2194_v30 }
 0x239   : > { %v562_v37 = vmax.f32 %v552_v39, 0.0  ;;  %v310_v39 = vld [vmem:[#allocation5 + $0x318] sm:$0xff] }
 0x23a   : > { %v563_v6 = vmax.f32 %v554_v55, 0.0  ;;  %v557_v16 = vpop.f32.mrb[2].mxu1  ;;  %v1505_v51 = vpack.c.bf16 %v310_v39, %v309_v38  ;;  %v311_v55 = vld [vmem:[#allocation5 + $0x328] sm:$0xff] }
 0x23b   : > { %v558_v4 = vadd.f32 %v557_v16, %v2190_v29  ;;  %v559_v42 = vpop.f32.mrb[3].mxu1 }
 0x23c   : > { %v560_v48 = vadd.f32 %v559_v42, %v2194_v30  ;;  %630 = vmatprep.mubr.f32.mxu0 %v563_v6  ;;  %v312_v6 = vld [vmem:[#allocation5 + $0x338] sm:$0xff] }
 0x23d   : > { %631 = vmatmul.mubr.f32.vlgmr.msra.gmra.mrb[4].mxu0 %v562_v37  ;;  %v564_v10 = vmax.f32 %v558_v4, 0.0  ;;  %v1509_v16 = vpack.c.bf16 %v312_v6, %v311_v55  ;;  %v314_v37 = vld [vmem:[#allocation5 + $0x358] sm:$0xff] }
 0x23e   : > { %v565_v60 = vmax.f32 %v560_v48, 0.0  ;;  %1380 = vmatpush1.bf16.msra.mxu0 %v1922_v8  ;;  %v316_v42 = vld [vmem:[#allocation5 + $0x378] sm:$0xff] }
 0x23f   : > { %1382 = vmatprep.subr.bf16.mxu0 %v1924_v9  ;;  %v2217_v9 = vld [vmem:[#allocation5 + $0x501] ss:$0 sm:$0xff] }
 0x240   : > { %635 = vmatprep.mubr.f32.mxu0 %v565_v60  ;;  %v317_v60 = vld [vmem:[#allocation5 + $0x388] sm:$0xff] }
 0x241   : > { %636 = vmatmul.mubr.f32.gmra.mrb[6].mxu0 %v564_v10  ;;  %v318_v10 = vld [vmem:[#allocation5 + $0x398] sm:$0xff] }
 0x242   : > { %1384 = vmatpush1.bf16.msra.mxu0 %v1928_v14  ;;  %707 = vmatprep.mubr.f32.mxu0 %v2354_v12 }
 0x243   : > { %1386 = vmatprep.subr.bf16.mxu0 %v1931_v15 }
 0x246   : > { %1388 = vmatpush1.bf16.msra.mxu0 %v1934_v20 }
 0x247   : > { %1390 = vmatprep.subr.bf16.mxu0 %v1937_v21 }
 0x24a   : > { %1392 = vmatpush1.bf16.msra.mxu0 %v1949_v32 }
 0x24b   : > { %1394 = vmatprep.subr.bf16.mxu0 %v1955_v40  ;;  %v2355_v40 = vld [vmem:[#allocation11_spill] sm:$0xff] }
 0x24e   : > { %1396 = vmatpush1.bf16.msra.mxu0 %v1967_v57 }
 0x24f   : > { %1398 = vmatprep.subr.bf16.mxu0 %v1973_v63 }
 0x252   : > { %1400 = vmatpush1.bf16.msra.mxu0 %v1979_v19 }
 0x253   : > { %1402 = vmatprep.subr.bf16.mxu0 %v1985_v28  ;;  %v2356_v28 = vld [vmem:[#allocation13_spill] sm:$0xff] }
 0x256   : > { %1404 = vmatpush1.bf16.msra.mxu0 %v1993_v46  ;;  %v2357_v46 = vld [vmem:[#allocation12_spill] sm:$0xff] }
 0x257   : > { %1406 = vmatprep.subr.bf16.mxu0 %v2001_v53 }
 0x25a   : > { %1408 = vmatpush1.bf16.msra.mxu0 %v2011_v7  ;;  %v2358_v7 = vld [vmem:[#allocation14_spill] sm:$0xff] }
 0x25b   : > { %1474 = vmatprep.subr.bf16.mxu0 %v2092_v33  ;;  %v2366_v33 = vld [vmem:[#allocation22_spill] sm:$0xff] }
 0x310   : > { %v1152_v8 = vpop.f32.mrb[4].mxu0 }
 0x311   : > { %v1153_v14 = vpop.f32.mrb[5].mxu0 }
 0x312   : > { %v1154_v15 = vadd.f32 %v1153_v14, %v1152_v8  ;;  %v319_v8 = vld [vmem:[#allocation5 + $0x3a8] sm:$0xff]  ;;  %v320_v14 = vld [vmem:[#allocation5 + $0x3b8] sm:$0xff] }
 0x314   : > { %v633_v20 = vadd.f32 %v1154_v15, %v2217_v9  ;;  %v1155_v21 = vpop.f32.mrb[6].mxu0  ;;  %v1525_v15 = vpack.c.bf16 %v320_v14, %v319_v8 }
 0x315   : > { %v1156_v32 = vpop.f32.mrb[7].mxu0 }
 0x316   : > { %v641_v57 = vadd.f32 %v633_v20, %v2355_v40  ;;  %v1157_v63 = vadd.f32 %v1156_v32, %v1155_v21  ;;  %v321_v20 = vld [vmem:[#allocation5 + $0x3c8] sm:$0xff]  ;;  %v322_v21 = vld [vmem:[#allocation5 + $0x3d8] sm:$0xff] }
 0x317   : > { %v1529_v32 = vpack.c.bf16 %v322_v21, %v321_v20 }
 0x318   : > { %v638_v19 = vadd.f32 %v1157_v63, %v2217_v9  ;;  %708 = vmatmul.mubr.f32.vlgmr.msra.gmra.mrb[8].mxu0 %v641_v57  ;;  %v323_v57 = vld [vmem:[#allocation5 + $0x3e8] sm:$0xff]  ;;  %v324_v63 = vld [vmem:[#allocation5 + $0x3f8] sm:$0xff] }
 0x319   : > { %713 = vmatprep.mubr.f32.mxu0 %v2354_v12  ;;  %1476 = vmatpush3.bf16.msra.mxu0 %v2356_v28  ;;  %v1521_v12 = vpack.c.bf16 %v318_v10, %v317_v60 }
 0x31a   : > { %v642_v53 = vadd.f32 %v638_v19, %v2357_v46  ;;  %1478 = vmatprep.subr.bf16.mxu0 %v2358_v7  ;;  %v1533_v19 = vpack.c.bf16 %v324_v63, %v323_v57 }
 0x31c   : > { %714 = vmatmul.mubr.f32.gmra.mrb[10].mxu0 %v642_v53 }
 0x31d   : > { %1480 = vmatpush3.bf16.msra.mxu0 %v2359_v24 }
 0x31e   : > { %1482 = vmatprep.subr.bf16.mxu0 %v2360_v25 }
 0x321   : > { %1484 = vmatpush3.bf16.msra.mxu0 %v2361_v45 }
 0x322   : > { %1486 = vmatprep.subr.bf16.mxu0 %v2362_v44 }
 0x325   : > { %1488 = vmatpush3.bf16.msra.mxu0 %v2363_v56 }
 0x326   : > { %1490 = vmatprep.subr.bf16.mxu0 %v2364_v1 }
 0x329   : > { %1492 = vmatpush3.bf16.msra.mxu0 %v2365_v17 }
 0x32a   : > { %1494 = vmatprep.subr.bf16.mxu0 %v2366_v33 }
 0x32d   : > { %1496 = vmatpush3.bf16.msra.mxu0 %v2367_v41 }
 0x32e   : > { %1498 = vmatprep.subr.bf16.mxu0 %v2368_v2 }
 0x331   : > { %1500 = vmatpush3.bf16.msra.mxu0 %v2178_v50 }
 0x332   : > { %1502 = vmatprep.subr.bf16.mxu0 %v2181_v27 }
 0x335   : > { %1504 = vmatpush3.bf16.msra.mxu0 %v2183_v58 }
 0x336   : > { %1506 = vmatprep.subr.bf16.mxu0 %v1505_v51 }
 0x3eb   : > { %v709_v3 = vpop.f32.mrb[8].mxu0 }
 0x3ec   : > { %v710_v23 = vadd.f32 %v709_v3, %v2137_v18  ;;  %v711_v35 = vpop.f32.mrb[9].mxu0 }
 0x3ed   : > { %v712_v59 = vadd.f32 %v711_v35, %v2141_v36 }
 0x3ee   : > { %v720_v0 = vmax.f32 %v710_v23, 0.0 }
 0x3ef   : > { %v721_v61 = vmax.f32 %v712_v59, 0.0  ;;  %v715_v43 = vpop.f32.mrb[10].mxu0 }
 0x3f0   : > { %v716_v31 = vadd.f32 %v715_v43, %v2137_v18  ;;  %v717_v47 = vpop.f32.mrb[11].mxu0 }
 0x3f1   : > { %v718_v54 = vadd.f32 %v717_v47, %v2141_v36  ;;  %788 = vmatprep.mubr.f32.mxu1 %v721_v61 }
 0x3f2   : > { %789 = vmatmul.mubr.f32.vlgmr.msra.gmra.mrb[4].mxu1 %v720_v0  ;;  %v722_v26 = vmax.f32 %v716_v31, 0.0 }
 0x3f3   : > { %v723_v22 = vmax.f32 %v718_v54, 0.0 }
 0x3f5   : > { %794 = vmatprep.mubr.f32.mxu1 %v723_v22 }
 0x3f6   : > { %795 = vmatmul.mubr.f32.gmra.mrb[6].mxu1 %v722_v26 }
 0x4c5   : > { %v790_v49 = vpop.f32.mrb[4].mxu1 }
 0x4c6   : > { %v791_v50 = vadd.f32 %v790_v49, %v2190_v29  ;;  %v792_v62 = vpop.f32.mrb[5].mxu1 }
 0x4c7   : > { %v793_v5 = vadd.f32 %v792_v62, %v2194_v30 }
 0x4c8   : > { %v801_v52 = vmax.f32 %v791_v50, 0.0 }
 0x4c9   : > { %v802_v27 = vmax.f32 %v793_v5, 0.0  ;;  %v796_v34 = vpop.f32.mrb[6].mxu1 }
 0x4ca   : > { %v797_v18 = vadd.f32 %v796_v34, %v2190_v29  ;;  %v798_v58 = vpop.f32.mrb[7].mxu1  ;;  %v313_v29 = vld [vmem:[#allocation5 + $0x348] sm:$0xff] }
 0x4cb   : > { %v799_v36 = vadd.f32 %v798_v58, %v2194_v30  ;;  %869 = vmatprep.mubr.f32.mxu0 %v802_v27  ;;  %v1513_v4 = vpack.c.bf16 %v314_v37, %v313_v29  ;;  %v315_v30 = vld [vmem:[#allocation5 + $0x368] sm:$0xff] }
 0x4cc   : > { %870 = vmatmul.mubr.f32.vlgmr.msra.gmra.mrb[12].mxu0 %v801_v52  ;;  %v803_v13 = vmax.f32 %v797_v18, 0.0  ;;  %v1517_v48 = vpack.c.bf16 %v316_v42, %v315_v30 }
 0x4cd   : > { %v804_v11 = vmax.f32 %v799_v36, 0.0  ;;  %1508 = vmatpush3.bf16.msra.mxu0 %v1505_v51 }
 0x4ce   : > { %1510 = vmatprep.subr.bf16.mxu0 %v1509_v16 }
 0x4cf   : > { %874 = vmatprep.mubr.f32.mxu0 %v804_v11 }
 0x4d0   : > { %875 = vmatmul.mubr.f32.gmra.mrb[14].mxu0 %v803_v13 }
 0x4d1   : > { %1512 = vmatpush3.bf16.msra.mxu0 %v1509_v16 }
 0x4d2   : > { %1514 = vmatprep.subr.bf16.mxu0 %v1513_v4 }
 0x4d5   : > { %1516 = vmatpush3.bf16.msra.mxu0 %v1513_v4 }
 0x4d6   : > { %1518 = vmatprep.subr.bf16.mxu0 %v1517_v48 }
 0x4d9   : > { %1520 = vmatpush3.bf16.msra.mxu0 %v1517_v48 }
 0x4da   : > { %1522 = vmatprep.subr.bf16.mxu0 %v1521_v12 }
 0x4dd   : > { %1524 = vmatpush3.bf16.msra.mxu0 %v1521_v12 }
 0x4de   : > { %1526 = vmatprep.subr.bf16.mxu0 %v1525_v15 }
 0x4e1   : > { %1528 = vmatpush3.bf16.msra.mxu0 %v1525_v15 }
 0x4e2   : > { %1530 = vmatprep.subr.bf16.mxu0 %v1529_v32 }
 0x4e5   : > { %1532 = vmatpush3.bf16.msra.mxu0 %v1529_v32 }
 0x4e6   : > { %1534 = vmatprep.subr.bf16.mxu0 %v1533_v19 }
 0x4e9   : > { %1536 = vmatpush3.bf16.msra.mxu0 %v1533_v19 }
 0x59f   : > { %v1190_v28 = vpop.f32.mrb[12].mxu0 }
 0x5a0   : > { %v1191_v53 = vpop.f32.mrb[13].mxu0 }
 0x5a1   : > { %v1192_v7 = vadd.f32 %v1191_v53, %v1190_v28 }
 0x5a3   : > { %v872_v24 = vadd.f32 %v1192_v7, %v2217_v9  ;;  %v1193_v25 = vpop.f32.mrb[14].mxu0 }
 0x5a4   : > { %v1194_v45 = vpop.f32.mrb[15].mxu0 }
 0x5a5   : > { %v880_v44 = vadd.f32 %v872_v24, %v2355_v40  ;;  %v1195_v56 = vadd.f32 %v1194_v45, %v1193_v25 }
 0x5a7   : > { %v882_v1 = vrot.slane %v880_v44, 4  ;;  %v896_v17 = vmul.f32 %v880_v44, %v880_v44  ;;  %v877_v33 = vadd.f32 %v1195_v56, %v2217_v9 }
 0x5a9   : > { %v898_v41 = vrot.slane %v896_v17, 4  ;;  %v881_v2 = vadd.f32 %v877_v33, %v2357_v46  ;;  %v883_v3 = vadd.f32 %v882_v1, %v880_v44 }
 0x5ab   : > { %v899_v23 = vadd.f32 %v898_v41, %v896_v17  ;;  %v888_v35 = vrot.slane %v881_v2, 4  ;;  %v897_v59 = vmul.f32 %v881_v2, %v881_v2  ;;  %v884_v61 = vrot.slane %v883_v3, 2 }
 0x5ad   : > { %v900_v43 = vrot.slane %v899_v23, 2  ;;  %v889_v0 = vadd.f32 %v888_v35, %v881_v2  ;;  %v904_v31 = vrot.slane %v897_v59, 4  ;;  %v885_v47 = vadd.f32 %v884_v61, %v883_v3 }
 0x5af   : > { %v890_v54 = vrot.slane %v889_v0, 2  ;;  %v905_v22 = vadd.f32 %v904_v31, %v897_v59  ;;  %v886_v40 = vrot.slane %v885_v47, 1  ;;  %v901_v26 = vadd.f32 %v900_v43, %v899_v23 }
 0x5b1   : > { %v891_v49 = vadd.f32 %v890_v54, %v889_v0  ;;  %v906_v50 = vrot.slane %v905_v22, 2  ;;  %v887_v62 = vadd.f32 %v886_v40, %v885_v47  ;;  %v902_v9 = vrot.slane %v901_v26, 1 }
 0x5b3   : > { %v892_v5 = vrot.slane %v891_v49, 1  ;;  %v907_v27 = vadd.f32 %v906_v50, %v905_v22  ;;  %v894_v46 = vmul.f32 0.125, %v887_v62  ;;  %v903_v34 = vadd.f32 %v902_v9, %v901_v26 }
 0x5b5   : > { %v893_v52 = vadd.f32 %v892_v5, %v891_v49  ;;  %v908_v18 = vrot.slane %v907_v27, 1  ;;  %v910_v58 = vmul.f32 0.125, %v903_v34  ;;  %v912_v36 = vmul.f32 %v894_v46, %v894_v46 }
 0x5b7   : > { %v895_v11 = vmul.f32 0.125, %v893_v52  ;;  %v909_v13 = vadd.f32 %v908_v18, %v907_v27  ;;  %v914_v38 = vsub.f32 %v910_v58, %v912_v36 }
 0x5b9   : > { %v911_v39 = vmul.f32 0.125, %v909_v13  ;;  %v913_v51 = vmul.f32 %v895_v11, %v895_v11  ;;  %v916_v55 = vmax.f32 %v914_v38, 0.0 }
 0x5bb   : > { %v915_v6 = vsub.f32 %v911_v39, %v913_v51  ;;  %v918_v16 = vadd.f32 1e-05, %v916_v55 }
 0x5bd   : > { %v917_v29 = vmax.f32 %v915_v6, 0.0  ;;  %1605 = vrsqrt.f32 %v918_v16 }
 0x5bf   : > { %v919_v37 = vadd.f32 1e-05, %v917_v29 }
 0x5c1   : > { %1607 = vrsqrt.f32 %v919_v37 }
 0x5c7   : > { %v1606_v4 = vpop.eup %1605 }
 0x5c8   : > { %v922_v30 = vmul.f32 %v1606_v4, %v880_v44  ;;  %v924_v42 = vmul.f32 %v1606_v4, %v894_v46 }
 0x5ca   : > { %v926_v48 = vsub.f32 %v922_v30, %v924_v42 }
 0x5cb   : > { %v1608_v60 = vpop.eup %1607 }
 0x5cc   : > { %v923_v10 = vmul.f32 %v1608_v60, %v881_v2  ;;  %1246 = vmatprep.mubr.f32.mxu0 %v926_v48  ;;  %v925_v12 = vmul.f32 %v1608_v60, %v895_v11 }
 0x5ce   : > { %v927_v8 = vsub.f32 %v923_v10, %v925_v12 }
 0x5d0   : > { %1247 = vmatmul.mubr.f32.vlgmr.msra.gmra.mrb[16].mxu0 %v927_v8 }
 0x6a3   : > { %v1248_v14 = vpop.f32.mrb[16].mxu0 }
 0x6a4   : > { %1004 = vst [vmem:[%s176_s15 + $0x8] sm:$0xff] %v1248_v14  ;;  %v994_v15 = vpop.f32.mrb[17].mxu0 }
 0x6a5   : > { %1003 = vst [vmem:[%s176_s15] sm:$0xff] %v994_v15 }
 0x6a6   : > { %1680 = shalt.err (!%p1677_p7)
}
 0x6a7   : > { %s1681_s18 = scalar_lea.hbm %s2259_s28, 256  ;;  %s1685_s20 = scalar_lea.hbm %s2305_s2, 512 }
 0x6a8   : > { %p1682_p9 = scmp.ne.s32.totalorder %s2259_s28, %s1681_s18  ;;  %p1686_p5 = scmp.lt.u32.totalorder %s2259_s28, %s2305_s2 }
 0x6a9   : > { %p1687_p11 = scmp.lt.u32.totalorder %s1685_s20, %s1681_s18  ;;  %p1689_p4 = scmp.lt.u32.totalorder %s1681_s18, %s2259_s28 }
 0x6aa   : > { %p1683_p2 = pnand %p1682_p9, %p1855_p12 }
 0x6ab   : > { %p1688_p1 = por %p1687_p11, %p1686_p5 }
 0x6ac   : > { %p1684_p0 = pneg %p1683_p2 }
 0x6ad   : > { %p1690_p6 = por %p1689_p4, %p1688_p1 }
 0x6af   : > { %p1691_p8 = pnand %p1690_p6, %p1684_p0 }
 0x6b1   : > { %1694 = shalt.err (!%p1691_p8)
}
 0x6b2   : > { %s1747_s30 = smov 128   ;;  %s1748_s3 = smov 8  }
 0x6b3   : > { %1543 = dma.vmem_to_hbm [thread:$0]  (%p1855_p12), %s2254_s17, 256, %s2259_s28, %s1006_s4, %s1747_s30, %s1747_s30, %s1748_s3  }
 0x6b4 PF: > { %s1034_s15 = sand.u32 1, %s1725_s9   ;;  %p2369_p10 = scmp.ne.s32.totalorder %s2329_s16, 0 }
 0x6b5   : > { %p2370_p13 = scmp.ge.s32.totalorder %s1737_s12, 2  ;;  %s1035_s27 = scalar_lea.sflag [#allocation4], %s1034_s15 }
 0x6b7   : > { %p1554_p3 = pnand %p2370_p13, %p2369_p10 }
 0x6b9   : > { %1720 = dma.done.wait (!%p1554_p3), %s1035_s27, 256  }
 0x6ba   : > { %1722 = vsyncadd (!%p1554_p3), %s1035_s27, 4294967040  ;;  %p16_p7 = scmp.ge.s32.totalorder %s1820_s21, 4   ;;  %s2371_s9 = smov %s1729_s10 }
 0x6bb   : > { %s2372_s10 = smov %s1733_s11  ;;  %s2373_s11 = smov %s1851_s8 }
 0x6bc   : > { %s2374_s12 = smov %s1820_s21  ;;  %18 = sbr.rel (!%p16_p7) target bundleno = 6 (0x6), region = 79 }
 0x6c3   :  { %1040 = vsyncpa [#allocation3], 1 }
 0x6c4   :  { %1042 = vsyncpa [#allocation3 + $0x1], 1 }
 0x6c5   :  { %1043 = vsyncpa [#allocation6], 1 }
 0x6c6   :  { %1044 = vsyncpa [#allocation4], 1 }
 0x6c7   :  { %1046 = vsyncpa [#allocation4 + $0x1], 1 }

</bundles_post_ra>
